<compile_context>
chip_gen: v7x
topology: tpu7x:2x2x1
jax: 0.10.0
libtpu: 0.0.40
codegen_flags: <defaults>
</compile_context>

<pallas_src>
import functools

import jax
import jax.numpy as jnp
from jax.experimental import pallas as pl
from jax.experimental.pallas import tpu as pltpu


# ----------------------------------------------------------------------------
# Helpers
# ----------------------------------------------------------------------------
def _ceil_to(a, m):
    return -(-a // m) * m


# ----------------------------------------------------------------------------
# Pallas kernels
# ----------------------------------------------------------------------------
def _mm_small_kernel(*refs, act, has_bias):
    """Single-block matmul with optional bias + activation epilogue (f32)."""
    if has_bias:
        a_ref, b_ref, bias_ref, o_ref = refs
    else:
        a_ref, b_ref, o_ref = refs
    acc = jnp.dot(a_ref[...], b_ref[...], preferred_element_type=jnp.float32)
    if has_bias:
        acc = acc + bias_ref[...]
    if act == "relu":
        acc = jnp.maximum(acc, 0.0)
    elif act == "sigmoid":
        acc = jax.nn.sigmoid(acc)
    o_ref[...] = acc


def _mm_tiled_kernel(*refs, act, has_bias):
    """Grid-tiled bf16 matmul, f32 VMEM accumulator, epilogue at last K step."""
    if has_bias:
        a_ref, b_ref, bias_ref, o_ref, acc_ref = refs
    else:
        a_ref, b_ref, o_ref, acc_ref = refs

    @pl.when(pl.program_id(2) == 0)
    def _():
        acc_ref[...] = jnp.zeros_like(acc_ref)

    acc_ref[...] += jnp.dot(a_ref[...], b_ref[...],
                            preferred_element_type=jnp.float32)

    @pl.when(pl.program_id(2) == pl.num_programs(2) - 1)
    def _():
        acc = acc_ref[...]
        if has_bias:
            acc = acc + bias_ref[...]
        if act == "relu":
            acc = jnp.maximum(acc, 0.0)
        elif act == "sigmoid":
            acc = jax.nn.sigmoid(acc)
        o_ref[...] = acc


def pallas_matmul(a, b, bias=None, act="none"):
    """o = act(a @ b + bias).  Small shapes: one f32 full block (no padding).
    Large shapes: bf16 operands on a (M/tm, N/tn, K/tk) grid with f32 accum."""
    M, K = a.shape
    K2, N = b.shape
    assert K == K2
    has_bias = bias is not None

    if max(M, K, N) <= 256:
        a32 = a.astype(jnp.float32)
        b32 = b.astype(jnp.float32)
        args = [a32, b32]
        in_specs = [pl.BlockSpec((M, K), lambda i: (0, 0)),
                    pl.BlockSpec((K, N), lambda i: (0, 0))]
        if has_bias:
            args.append(bias.astype(jnp.float32).reshape(1, N))
            in_specs.append(pl.BlockSpec((1, N), lambda i: (0, 0)))
        return pl.pallas_call(
            functools.partial(_mm_small_kernel, act=act, has_bias=has_bias),
            out_shape=jax.ShapeDtypeStruct((M, N), jnp.float32),
            grid=(1,),
            in_specs=in_specs,
            out_specs=pl.BlockSpec((M, N), lambda i: (0, 0)),
        )(*args)

    # Scalable path: bf16 operands on the MXU, 256-aligned tiles, f32 accum.
    tm = min(256, _ceil_to(M, 16))
    tk = min(256, _ceil_to(K, 128))
    tn = min(256, _ceil_to(N, 128))
    Mp, Kp, Np = _ceil_to(M, tm), _ceil_to(K, tk), _ceil_to(N, tn)
    a_p = jnp.pad(a.astype(jnp.bfloat16), ((0, Mp - M), (0, Kp - K)))
    b_p = jnp.pad(b.astype(jnp.bfloat16), ((0, Kp - K), (0, Np - N)))
    args = [a_p, b_p]
    in_specs = [pl.BlockSpec((tm, tk), lambda i, j, k: (i, k)),
                pl.BlockSpec((tk, tn), lambda i, j, k: (k, j))]
    if has_bias:
        bias_p = jnp.pad(bias.astype(jnp.float32).reshape(1, N),
                         ((0, 0), (0, Np - N)))
        args.append(bias_p)
        in_specs.append(pl.BlockSpec((1, tn), lambda i, j, k: (0, j)))
    out = pl.pallas_call(
        functools.partial(_mm_tiled_kernel, act=act, has_bias=has_bias),
        out_shape=jax.ShapeDtypeStruct((Mp, Np), jnp.float32),
        grid=(Mp // tm, Np // tn, Kp // tk),
        in_specs=in_specs,
        out_specs=pl.BlockSpec((tm, tn), lambda i, j, k: (i, j)),
        scratch_shapes=[pltpu.VMEM((tm, tn), jnp.float32)],
        compiler_params=pltpu.CompilerParams(
            dimension_semantics=("parallel", "parallel", "arbitrary")),
        cost_estimate=pl.CostEstimate(
            flops=2 * M * N * K,
            transcendentals=0,
            bytes_accessed=2 * (M * K + K * N) + 4 * M * N),
    )(*args)
    return out[:M, :N]


def _head_kernel(pool_ref, emb_ref, w_ref, b_ref, o_ref):
    """Fused graph pooling + classifier: (pool @ emb) @ W_clf + b."""
    pooled = jnp.dot(pool_ref[...], emb_ref[...],
                     preferred_element_type=jnp.float32)
    o_ref[...] = jnp.dot(pooled, w_ref[...],
                         preferred_element_type=jnp.float32) + b_ref[...]


def pallas_pool_classify(pool_mat, emb, w_clf, b_clf):
    B, N = pool_mat.shape
    N2, H = emb.shape
    H2, C = w_clf.shape
    assert N == N2 and H == H2
    return pl.pallas_call(
        _head_kernel,
        out_shape=jax.ShapeDtypeStruct((B, C), jnp.float32),
        grid=(1,),
        in_specs=[pl.BlockSpec((B, N), lambda i: (0, 0)),
                  pl.BlockSpec((N, H), lambda i: (0, 0)),
                  pl.BlockSpec((H, C), lambda i: (0, 0)),
                  pl.BlockSpec((1, C), lambda i: (0, 0))],
        out_specs=pl.BlockSpec((B, C), lambda i: (0, 0)),
    )(pool_mat.astype(jnp.float32), emb.astype(jnp.float32),
      w_clf.astype(jnp.float32), b_clf.astype(jnp.float32).reshape(1, C))


def _sig_add_kernel(x_ref, n_ref, o_ref):
    o_ref[...] = jax.nn.sigmoid(x_ref[...] + n_ref[...])


def pallas_sigmoid_add(x_flat, noise_flat):
    """sigmoid(x + noise) on a lane-dense (1, E) layout; returns flat [E]."""
    E = x_flat.shape[0]
    x2 = x_flat.reshape(1, E).astype(jnp.float32)
    n2 = noise_flat.reshape(1, E).astype(jnp.float32)
    out = pl.pallas_call(
        _sig_add_kernel,
        out_shape=jax.ShapeDtypeStruct((1, E), jnp.float32),
        grid=(1,),
        in_specs=[pl.BlockSpec((1, E), lambda i: (0, 0)),
                  pl.BlockSpec((1, E), lambda i: (0, 0))],
        out_specs=pl.BlockSpec((1, E), lambda i: (0, 0)),
    )(x2, n2)
    return out.reshape(E)


def _kl2_kernel(a_ref, o_ref, *, r):
    a = a_ref[...]
    o_ref[...] = a * jnp.log(a / r + 1e-6) + (1.0 - a) * jnp.log(
        (1.0 - a) / (1.0 - r + 1e-6) + 1e-6)


def pallas_kl2_terms(att_flat, r):
    """Elementwise KL-to-prior term on lane-dense (1, E); mean taken outside
    over exactly the E real lanes (no padding, so no masked-lane pollution)."""
    E = att_flat.shape[0]
    a2 = att_flat.reshape(1, E).astype(jnp.float32)
    out = pl.pallas_call(
        functools.partial(_kl2_kernel, r=float(r)),
        out_shape=jax.ShapeDtypeStruct((1, E), jnp.float32),
        grid=(1,),
        in_specs=[pl.BlockSpec((1, E), lambda i: (0, 0))],
        out_specs=pl.BlockSpec((1, E), lambda i: (0, 0)),
    )(a2)
    return out.reshape(E)


# ----------------------------------------------------------------------------
# Synthetic GNN / aggregator (the externally-supplied submodules)
# ----------------------------------------------------------------------------
def init_gnn_params(key, feat_dim, hidden, num_classes, edge_dim):
    ks = jax.random.split(key, 5)
    s = 0.1
    W_self = jax.random.normal(ks[2], (hidden, hidden), jnp.float32) * s
    W_nbr = jax.random.normal(ks[3], (hidden, hidden), jnp.float32) * s
    return dict(
        W_in=jax.random.normal(ks[0], (feat_dim, hidden), jnp.float32) * s,
        b_in=jnp.zeros((hidden,), jnp.float32),
        W_edge=jax.random.normal(ks[1], (edge_dim, 1), jnp.float32) * s,
        b_edge=jnp.zeros((1,), jnp.float32),
        # W_comb hoisted: concat done once at init, not per forward.
        W_comb=jnp.concatenate([W_self, W_nbr], axis=0),
        b_comb=jnp.zeros((hidden,), jnp.float32),
        W_clf=jax.random.normal(ks[4], (hidden, num_classes), jnp.float32) * s,
        b_clf=jnp.zeros((num_classes,), jnp.float32),
    )


def init_agg_params(key, hidden):
    k0, _ = jax.random.split(key)
    return dict(
        W_att=jax.random.normal(k0, (hidden, 2), jnp.float32) * 0.1,
        b_att=jnp.zeros((2,), jnp.float32),
    )


def gnn_precompute(p, x, edge_attr):
    """Edge-attention-independent part: computed once, reused across passes."""
    h0 = pallas_matmul(x, p["W_in"], p["b_in"], act="relu")                     # [N,H]
    ew = pallas_matmul(edge_attr, p["W_edge"], p["b_edge"], act="sigmoid")[:, 0]  # [E]
    return h0, ew


def gnn_emb_from_pre(p, h0, ew, edge_index, edge_atten=None):
    """Edge-attention-dependent part: adjacency build + aggregation + combine."""
    n_nodes = h0.shape[0]
    w = ew if edge_atten is None else ew * edge_atten[:, 0]
    # glue: scatter-add dense weighted adjacency (data-dependent indices)
    adj = jnp.zeros((n_nodes, n_nodes), jnp.float32).at[
        edge_index[1], edge_index[0]].add(w)
    agg = pallas_matmul(adj, h0)                                                # [N,H]
    combined = jnp.concatenate([h0, agg], axis=1)                               # [N,2H]
    emb = pallas_matmul(combined, p["W_comb"], p["b_comb"], act="relu")         # [N,H]
    return emb


def gnn_logits_from_pre(p, h0, ew, edge_index, batch, edge_atten, num_graphs):
    emb = gnn_emb_from_pre(p, h0, ew, edge_index, edge_atten)
    # Build pooling matrix directly as [B, N] (no one-hot + transpose).
    pool = (batch[None, :] ==
            jnp.arange(num_graphs, dtype=batch.dtype)[:, None]).astype(jnp.float32)
    return pallas_pool_classify(pool, emb, p["W_clf"], p["b_clf"])              # [B,C]


def aggregator(p, emb, edge_index):
    sd = pallas_matmul(emb, p["W_att"], p["b_att"])                             # [N,2]
    # glue: gather along edge_index (data-dependent)
    e_logit = sd[edge_index[0], 0] + sd[edge_index[1], 1]                       # [E]
    return e_logit


# ----------------------------------------------------------------------------
# readout_graph forward
# ----------------------------------------------------------------------------
def get_r(decay_interval, decay_r, current_epoch, init_r=0.9, final_r=0.5):
    r = init_r - (current_epoch // decay_interval) * decay_r
    return final_r if r < final_r else r


def criterion(logits, y):
    # softmax cross-entropy with integer labels (Criterion(aux_info))
    logp = jax.nn.log_softmax(logits, axis=-1)
    return -jnp.mean(jnp.take_along_axis(logp, y[:, None], axis=1))


def readout_graph_forward(params, data, epoch, training, key):
    cfg = params["cfg"]
    num_graphs = int(data["y"].shape[0])
    x, ei, ea, batch = data["x"], data["edge_index"], data["edge_attr"], data["batch"]
    k_att, k_delta = jax.random.split(key, 2)

    # ---- gnn_varphi_1 / aggregator_1  ->  M  (sigmoid, no noise) ----
    h0_1, ew_1 = gnn_precompute(params["gnn1"], x, ea)
    emb1 = gnn_emb_from_pre(params["gnn1"], h0_1, ew_1, ei)
    e1 = aggregator(params["agg1"], emb1, ei)                                   # [E]
    M_flat = pallas_sigmoid_add(e1, jnp.zeros_like(e1))
    M = M_flat[:, None]                                                         # [E,1]

    # ---- gnn_varphi_2: precompute once, reuse for attention + 3 classifiers ----
    h0_2, ew_2 = gnn_precompute(params["gnn2"], x, ea)
    emb2 = gnn_emb_from_pre(params["gnn2"], h0_2, ew_2, ei)
    e2 = aggregator(params["agg2"], emb2, ei)                                   # [E]
    if training:
        u = jax.random.uniform(k_att, e2.shape, jnp.float32,
                               minval=1e-10, maxval=1.0 - 1e-10)
        logistic = jnp.log(u) - jnp.log(1.0 - u)
    else:
        logistic = jnp.zeros_like(e2)
    edge_att_flat = pallas_sigmoid_add(e2, logistic)
    edge_att = edge_att_flat[:, None]                                           # [E,1]

    clf_logits = gnn_logits_from_pre(
        params["gnn2"], h0_2, ew_2, ei, batch, edge_att, num_graphs)

    random_noise = jax.random.uniform(k_delta, M.shape, jnp.float32,
                                      minval=1e-10, maxval=1.0 - 1e-10)
    M_delta = random_noise + M
    edge_att_det = jax.lax.stop_gradient(edge_att)
    edge_M = M * edge_att_det
    edge_M_delta = M_delta * edge_att_det

    # TODO(synk): gnn_varphi_2.eval()/.train() toggling is a no-op here — the
    # synthetic GNN has no dropout/BatchNorm, so train/eval forward coincide.
    clf_logits_M = gnn_logits_from_pre(
        params["gnn2"], h0_2, ew_2, ei, batch, edge_M, num_graphs)
    clf_logits_M_delta = gnn_logits_from_pre(
        params["gnn2"], h0_2, ew_2, ei, batch, edge_M_delta, num_graphs)

    if training:
        loss_normal = jnp.sum(jnp.abs(M))
        # torch kl_div(input=log p.detach(), target=q, 'batchmean'); use a
        # detached log_softmax (stable, no -inf from underflowing softmax).
        log_p_det = jax.lax.stop_gradient(jax.nn.log_softmax(clf_logits, axis=-1))
        log_q = jax.nn.log_softmax(clf_logits_M, axis=-1)
        q = jnp.exp(log_q)
        loss_kl_1 = jnp.sum(q * (log_q - log_p_det)) / clf_logits.shape[0]
        r = get_r(10, 0.1, epoch, init_r=0.9, final_r=0.7)
        loss_kl_2 = jnp.mean(pallas_kl2_terms(edge_att_flat, r))
        loss_GC = criterion(clf_logits, data["y"])
        loss_GC_delta = criterion(clf_logits_M_delta, data["y"])
        loss_m = (cfg["normal_coef"] * loss_normal
                  + cfg["kl_1_coef"] * loss_kl_1
                  + cfg["GC_delta_coef"] * loss_GC_delta)
        loss = cfg["kl_2_coef"] * loss_kl_2 + cfg["GC_coef"] * loss_GC
    else:
        loss = jnp.float32(0.0)
        loss_m = jnp.float32(0.0)

    return edge_att, clf_logits_M, loss, loss_m


# ----------------------------------------------------------------------------
# Main
# ----------------------------------------------------------------------------
if __name__ == "__main__":
    key = jax.random.PRNGKey(0)
    k_param1, k_param2, k_agg1, k_agg2, k_x, k_ea, k_fwd = jax.random.split(key, 7)

    # small synthetic graph batch: 2 graphs x 8 nodes, ring edges both ways
    N_NODES, N_GRAPHS, FEAT, HIDDEN, N_CLASSES, EDGE_DIM = 16, 2, 8, 16, 3, 4
    per = N_NODES // N_GRAPHS
    src, dst = [], []
    for g in range(N_GRAPHS):
        off = g * per
        for i in range(per):
            a, b = off + i, off + (i + 1) % per
            src += [a, b]
            dst += [b, a]
    edge_index = jnp.array([src, dst], dtype=jnp.int32)          # [2, 32]
    n_edges = edge_index.shape[1]

    data = dict(
        x=jax.random.normal(k_x, (N_NODES, FEAT), jnp.float32),
        edge_index=edge_index,
        edge_attr=jax.random.normal(k_ea, (n_edges, EDGE_DIM), jnp.float32),
        batch=jnp.repeat(jnp.arange(N_GRAPHS, dtype=jnp.int32), per),
        y=jnp.array([0, 1], dtype=jnp.int32),
    )

    params = dict(
        gnn1=init_gnn_params(k_param1, FEAT, HIDDEN, N_CLASSES, EDGE_DIM),
        gnn2=init_gnn_params(k_param2, FEAT, HIDDEN, N_CLASSES, EDGE_DIM),
        agg1=init_agg_params(k_agg1, HIDDEN),
        agg2=init_agg_params(k_agg2, HIDDEN),
        cfg=dict(normal_coef=0.01, kl_1_coef=1.0, kl_2_coef=1.0,
                 GC_coef=1.0, GC_delta_coef=1.0),
    )

    edge_att, clf_logits_M, loss, loss_m = readout_graph_forward(
        params, data, epoch=5, training=True, key=k_fwd
    )
    jax.block_until_ready((edge_att, clf_logits_M, loss, loss_m))

    assert edge_att.shape == (n_edges, 1)
    assert clf_logits_M.shape == (N_GRAPHS, N_CLASSES)
    assert jnp.isfinite(loss) and jnp.isfinite(loss_m)

    # Exercise the grid-tiled bf16 matmul path (used when graphs are large).
    ka, kb = jax.random.split(jax.random.PRNGKey(1), 2)
    A = jax.random.normal(ka, (512, 384), jnp.float32)
    Bm = jax.random.normal(kb, (384, 512), jnp.float32)
    bias = jnp.arange(512, dtype=jnp.float32) * 0.01
    out_tiled = pallas_matmul(A, Bm, bias, act="relu")
    ref_tiled = jnp.maximum(
        jnp.dot(A.astype(jnp.bfloat16).astype(jnp.float32),
                Bm.astype(jnp.bfloat16).astype(jnp.float32)) + bias[None, :], 0.0)
    jax.block_until_ready(out_tiled)
    assert out_tiled.shape == (512, 512)
    assert jnp.allclose(out_tiled, ref_tiled, rtol=1e-2, atol=1e-2)

    print("KERNEL_OK")
</pallas_src>

<mosaic_0001>
module attributes {stable_mosaic.version = 11 : i64} {
  func.func @_mm_small_kernel(%arg0: i32, %arg1: memref<16x8xf32, #tpu.memory_space<vmem>>, %arg2: memref<8x16xf32, #tpu.memory_space<vmem>>, %arg3: memref<1x16xf32, #tpu.memory_space<vmem>>, %arg4: memref<16x16xf32, #tpu.memory_space<vmem>>) attributes {dimension_semantics = [#tpu.dimension_semantics<arbitrary>], iteration_bounds = array<i64: 1>, scalar_prefetch = 0 : i64, scratch_operands = 0 : i64, tpu.core_type = #tpu.core_type<tc>, window_params = [{pipeline_mode = #tpu.pipeline_mode<synchronous>, transform_indices = @transform_0, window_bounds = array<i64: 16, 8>}, {pipeline_mode = #tpu.pipeline_mode<synchronous>, transform_indices = @transform_1, window_bounds = array<i64: 8, 16>}, {pipeline_mode = #tpu.pipeline_mode<synchronous>, transform_indices = @transform_2, window_bounds = array<i64: 1, 16>}, {pipeline_mode = #tpu.pipeline_mode<synchronous>, transform_indices = @transform_3, window_bounds = array<i64: 16, 16>}]} {
    %c0 = arith.constant 0 : index
    %c0_0 = arith.constant 0 : index
    %0 = vector.load %arg1[%c0, %c0_0] : memref<16x8xf32, #tpu.memory_space<vmem>>, vector<16x8xf32>
    %c0_1 = arith.constant 0 : index
    %c0_2 = arith.constant 0 : index
    %1 = vector.load %arg2[%c0_1, %c0_2] : memref<8x16xf32, #tpu.memory_space<vmem>>, vector<8x16xf32>
    %cst = arith.constant dense<0.000000e+00> : vector<16x16xf32>
    %2 = tpu.matmul %0, %1, %cst {dimension_numbers = #tpu.dot_dimension_numbers<[1], [0], [0], [1], [0, 0, 1, 1], [], []>} : vector<16x8xf32>, vector<8x16xf32>, vector<16x16xf32> -> vector<16x16xf32>
    %c0_3 = arith.constant 0 : index
    %c0_4 = arith.constant 0 : index
    %3 = vector.load %arg3[%c0_3, %c0_4] : memref<1x16xf32, #tpu.memory_space<vmem>>, vector<1x16xf32>
    %4 = vector.broadcast %3 : vector<1x16xf32> to vector<16x16xf32>
    %5 = arith.addf %2, %4 : vector<16x16xf32>
    %cst_5 = arith.constant 0.000000e+00 : f32
    %6 = vector.broadcast %cst_5 : f32 to vector<16x16xf32>
    %7 = arith.maximumf %5, %6 : vector<16x16xf32>
    %c0_6 = arith.constant 0 : index
    %c0_7 = arith.constant 0 : index
    %8 = vector.load %arg4[%c0_6, %c0_7] : memref<16x16xf32, #tpu.memory_space<vmem>>, vector<16x16xf32>
    tpu.vector_store %arg4[%c0_6, %c0_7], %7 {strides = array<i32>} : memref<16x16xf32, #tpu.memory_space<vmem>>, vector<16x16xf32>,
    return
  }
  func.func @transform_0(%arg0: i32) -> (i32, i32) {
    %c0_i32 = arith.constant 0 : i32
    %c0_i32_0 = arith.constant 0 : i32
    %c0_i32_1 = arith.constant 0 : i32
    return %c0_i32, %c0_i32_0 : i32, i32
  }
  func.func @transform_1(%arg0: i32) -> (i32, i32) {
    %c0_i32 = arith.constant 0 : i32
    %c0_i32_0 = arith.constant 0 : i32
    %c0_i32_1 = arith.constant 0 : i32
    return %c0_i32, %c0_i32_0 : i32, i32
  }
  func.func @transform_2(%arg0: i32) -> (i32, i32) {
    %c0_i32 = arith.constant 0 : i32
    %c0_i32_0 = arith.constant 0 : i32
    %c0_i32_1 = arith.constant 0 : i32
    return %c0_i32, %c0_i32_0 : i32, i32
  }
  func.func @transform_3(%arg0: i32) -> (i32, i32) {
    %c0_i32 = arith.constant 0 : i32
    %c0_i32_0 = arith.constant 0 : i32
    %c0_i32_1 = arith.constant 0 : i32
    return %c0_i32, %c0_i32_0 : i32, i32
  }
}

</mosaic_0001>

<bundles_post_ra>
// kernel: tpu_custom_call.1
= control target key start
LH: loop header
LB: loop body
LE: loop exit
PB: predicated region body
PF: predicated region fallthrough
CT: control target
= control target key end

     0   :  { %vm25_vm0 = vcmask 64512   ;;  %s213_s0 = inlined_call_operand.vmem [shape: f32[16,8], index: 0, kind: input, shape index: {}]   ;;  %s214_s1 = inlined_call_operand.vmem [shape: f32[8,16], index: 1, kind: input, shape index: {}]   ;;  %s215_s2 = inlined_call_operand.vmem [shape: f32[1,16], index: 2, kind: input, shape index: {}]   ;;  %s216_s3 = inlined_call_operand.hbm [shape: f32[16,16], index: 3, kind: output, shape index: {}]  }
   0x1   :  { %v17_v0 = vld [vmem:[%s214_s1] sm:$0xff]  ;;  %v16_v2 = vld [vmem:[%s213_s0 + $0x8] sm:$0xff] }
   0x2   :  { %v15_v1 = vld [vmem:[%s213_s0] sm:$0xff]  ;;  %134 = vmatprep.subr.mxu0 %v17_v0 }
   0x3   :  { %136 = vmatprep.mubr.msk.f32.mxu0 %vm25_vm0, %v15_v1 }
   0x4   :  { %8 = vsyncpa [#allocation3], 0  ;;  %135 = vmatpush3.msra.mxu0 %v17_v0  ;;  %v128_v3 = vld [vmem:[%s215_s2] ss:$0 sm:$0xff]  ;;  %s166_s1 = smov [#allocation2]   ;;  %vm109_vm1 = vcmask 130048  }
   0x5   :  { %137 = vmatmul.mubr.msk.f32.vlgmr.msra.gmra.mrb[0].mxu0 %vm25_vm0, %v16_v2  ;;  %s117_s20 = sshll.u32 %s166_s1, 4  ;;  %s118_s20 = int_to_ptr.vmem [resolvable:$true] %s117_s20 }
   0x6   :  { %s142_s0 = scalar_lea.vmem %s118_s20, 256  ;;  %p147_p1 = scmp.lt.s32.totalorder %s118_s20, %s118_s20 }
   0x7   :  { %p143_p0 = scmp.ne.s32.totalorder %s118_s20, %s142_s0  ;;  %p148_p2 = scmp.lt.s32.totalorder %s142_s0, %s142_s0 }
   0x9   :  { %p149_p3 = por %p148_p2, %p147_p1 }
   0xb   :  { %p150_p4 = pnand %p149_p3, %p143_p0 }
  0xd8   :  { %v138_v4 = vpop.f32.mrb[0].mxu0 }
  0xd9   :  { %v104_v5 = vadd.f32 %v138_v4, %v128_v3  ;;  %v98_v6 = vpop.f32.mrb[1].mxu0 }
  0xda   :  { %v99_v7 = vadd.f32 %v128_v3, %v98_v6 }
  0xdb   :  { %v108_v8 = vmax.f32 %v104_v5, 0.0 }
  0xdc   :  { %v107_v9 = vmax.f32 %v99_v7, 0.0 }
  0xdd   :  { %111 = vst.msk [vmem:[#allocation2 + $0x8] sm:$0xff] %vm109_vm1, %v108_v8 }
  0xde   :  { %110 = vst.msk [vmem:[#allocation2] sm:$0xff] %vm109_vm1, %v107_v9 }
  0xdf   :  { %153 = shalt.err (!%p150_p4)
}
  0xe0   :  { %s154_s22 = scalar_lea.hbm %s216_s3, 256 }
  0xe1   :  { %p155_p5 = scmp.ne.s32.totalorder %s216_s3, %s154_s22  ;;  %p158_p6 = scmp.lt.u32.totalorder %s154_s22, %s216_s3 }
  0xe3   :  { %p160_p7 = pnand %p158_p6, %p155_p5 }
  0xe5   :  { %163 = shalt.err (!%p160_p7)
}
  0xe6   :  { %s167_s27 = smov 128   ;;  %s168_s28 = smov 8  }
  0xe7   :  { %123 = dma.vmem_to_hbm [thread:$0]  %s118_s20, 256, %s216_s3, [#allocation3], %s167_s27, %s167_s27, %s168_s28  }
  0xe8   :  { %164 = dma.done.wait [#allocation3], 256  }
  0xe9   :  { %165 = vsyncadd [#allocation3], 4294967040 }
  0xea   :  { %127 = vsyncpa [#allocation3], 1 }

</bundles_post_ra>
